<compile_context>
chip_gen: v6e
topology: v6e:2x2x1
jax: 0.10.0
libtpu: 0.0.40
codegen_flags: <defaults>
</compile_context>

<pallas_src>
import jax
import jax.numpy as jnp
from jax import lax
from jax.experimental import pallas as pl
from jax.experimental.pallas import tpu as pltpu

# ---------------- configuration (small, consistent with the module) ----------
B = 2            # batch
T = 12           # input time steps == output_window
N = 16           # num_nodes
F_IN = 4         # input_dim / feature_dim
D_OUT = 8        # output_dim
OW = 12          # output_window (start_conv out channels; mlp is Linear(12, D))
GCN_DEPTH = 2    # args.gcn_depth
LAYERS = 3       # args.layers (only used for receptive-field arithmetic)
EPS = 1e-5       # LayerNorm eps

NF = N * F_IN          # 64  : flattened (node, feature) axis of the input
ND = N * D_OUT         # 128 : flattened (node, out-dim) lane axis (lane dense)
K_PAD = 128            # padded contraction dim (ones/bias column at index NF, rest zero)
BT = B * T             # 24  : both batch elements in one MXU operand
G_OFF = K_PAD          # gamma rows start at 128 (8-aligned)
BE_OFF = K_PAD + 16    # beta rows start at 144 (gamma region padded to 16 rows)
P_ROWS = K_PAD + 32    # 160 rows in the packed parameter slab


# ---------------------------------- kernel -----------------------------------
def lg_kernel(x_ref, p_ref, out_ref, pre_ref):
    # x_ref  : (BT, K_PAD)   augmented input: [x_flat | 1 | 0...] per row
    # p_ref  : (P_ROWS, ND)  packed params: rows [0:128] = W_aug (bias folded as row 64),
    #                        rows [128:140] = gamma, rows [144:156] = beta
    # out_ref, pre_ref : (BT, ND)
    w = p_ref[0:K_PAD, :]                 # (128, 128)
    g = p_ref[G_OFF:G_OFF + T, :]         # (12, 128)
    be = p_ref[BE_OFF:BE_OFF + T, :]      # (12, 128)

    # One MXU matmul covering both batch elements; bias already folded into W.
    y = jnp.dot(x_ref[...], w, preferred_element_type=jnp.float32)   # (24, 128)

    inv_cnt = 1.0 / float(T * ND)         # compile-time constant (per-batch LN count)

    # LayerNorm over all non-batch dims (T, N, D), strictly per batch element.
    for b in range(B):                    # B == 2: static unroll
        yb = y[b * T:(b + 1) * T, :]      # (12, 128) row-half
        mean = jnp.sum(yb) * inv_cnt
        d = yb - mean
        var = jnp.sum(d * d) * inv_cnt    # two-pass (centered) biased variance
        xa = d * lax.rsqrt(var + EPS) * g + be
        pre_ref[b * T:(b + 1) * T, :] = xa            # lane-dense 128-wide stores
        out_ref[b * T:(b + 1) * T, :] = jnp.maximum(xa, 0.0)


# --------------------------------- wrapper -----------------------------------
@jax.jit
def lg_forward(x, wc, bc, adj, wm, bm, gamma, beta):
    """x: (B,T,N,F_IN); wc: (OW,F_IN); bc: (OW,); adj: (N,N); wm: (D_OUT,OW);
    bm: (D_OUT,); gamma/beta: (T,N,D_OUT).  Returns (relu(x_ln), x_ln, x_ln)."""
    f32 = jnp.float32

    # --- wrapper-side algebraic fusion (exact) --------------------------------
    # sum(embedsLst) = (I + A + ... + A^GCN_DEPTH) e1
    p = jnp.eye(N, dtype=f32)
    a_pow = jnp.eye(N, dtype=f32)
    for _ in range(GCN_DEPTH):
        a_pow = a_pow @ adj
        p = p + a_pow
    w_chan = wc.T @ wm.T                                            # (F_IN, D_OUT)
    w_big = jnp.einsum('mn,fd->nfmd', p, w_chan).reshape(NF, ND)    # (64, 128)
    c = (p @ jnp.ones((N, 1), f32)) @ (bc[None, :] @ wm.T) + bm[None, :]   # (N, D_OUT)

    # W_aug: (128, 128) — rows [0:64] = W_big, row 64 = fused bias, rest zero.
    w_aug = jnp.zeros((K_PAD, ND), f32)
    w_aug = w_aug.at[:NF, :].set(w_big)
    w_aug = w_aug.at[NF, :].set(c.reshape(ND))

    # x_aug: (B*T, 128) — cols [0:64] = x, col 64 = 1, rest zero.
    x_flat = x.reshape(BT, NF).astype(f32)
    x_aug = jnp.zeros((BT, K_PAD), f32)
    x_aug = x_aug.at[:, :NF].set(x_flat)
    x_aug = x_aug.at[:, NF].set(1.0)

    # Single packed parameter slab (one DMA): W_aug | gamma | beta, 8-row aligned regions.
    params = jnp.zeros((P_ROWS, ND), f32)
    params = params.at[:K_PAD, :].set(w_aug)
    params = params.at[G_OFF:G_OFF + T, :].set(gamma.reshape(T, ND).astype(f32))
    params = params.at[BE_OFF:BE_OFF + T, :].set(beta.reshape(T, ND).astype(f32))

    out_shape = (
        jax.ShapeDtypeStruct((BT, ND), f32),
        jax.ShapeDtypeStruct((BT, ND), f32),
    )
    out, pre = pl.pallas_call(
        lg_kernel,
        out_shape=out_shape,
        grid_spec=pltpu.PrefetchScalarGridSpec(
            num_scalar_prefetch=0,
            grid=(1,),                                   # single invocation (B folded in)
            in_specs=[
                pl.BlockSpec((BT, K_PAD), lambda i: (0, 0)),
                pl.BlockSpec((P_ROWS, ND), lambda i: (0, 0)),
            ],
            out_specs=(
                pl.BlockSpec((BT, ND), lambda i: (0, 0)),
                pl.BlockSpec((BT, ND), lambda i: (0, 0)),
            ),
        ),
        compiler_params=pltpu.CompilerParams(dimension_semantics=("arbitrary",)),
    )(x_aug, params)

    out = out.reshape(B, T, N, D_OUT)
    pre = pre.reshape(B, T, N, D_OUT)
    # module returns (relu(x), x, x)
    return out, pre, pre


# ----------------------------------- main -------------------------------------
if __name__ == "__main__":
    key = jax.random.PRNGKey(0)
    ks = jax.random.split(key, 6)

    # model input (B, T, N, F)
    x = jax.random.normal(ks[0], (B, T, N, F_IN), dtype=jnp.float32)

    # start_conv: Conv2d(F_IN -> OW, kernel 1x1): weight (OW, F_IN), bias (OW,)
    wc = jax.random.normal(ks[1], (OW, F_IN), dtype=jnp.float32) * 0.1
    bc = jax.random.normal(ks[2], (OW,), dtype=jnp.float32) * 0.1

    # mlp: Linear(12 -> D_OUT): weight (D_OUT, 12), bias (D_OUT,)
    wm = jax.random.normal(ks[3], (D_OUT, OW), dtype=jnp.float32) * 0.1
    bm = jax.random.normal(ks[4], (D_OUT,), dtype=jnp.float32) * 0.1

    # deterministic symmetric normalized adjacency for the LightGCN layers
    logits = jax.random.uniform(ks[5], (N, N))
    a = (logits > 0.6).astype(jnp.float32)
    a = jnp.maximum(a, a.T) + jnp.eye(N, dtype=jnp.float32)
    dinv = 1.0 / jnp.sqrt(jnp.sum(a, axis=1))
    adj = a * dinv[:, None] * dinv[None, :]

    # LayerNorm affine params: shape (output_window, num_nodes, receptive_field - rf_size_j + 1)
    # reset_parameters(): weight = ones, bias = zeros; idx = arange(N) so weight[:, idx, :] == weight
    rf = LAYERS * 6 + D_OUT           # dilation_exponential == 1
    rf_j = 1 + LAYERS * 6
    ln_last = rf - rf_j + 1
    assert ln_last == D_OUT
    gamma = jnp.ones((OW, N, ln_last), dtype=jnp.float32)
    beta = jnp.zeros((OW, N, ln_last), dtype=jnp.float32)

    out, x_pre, _ = lg_forward(x, wc, bc, adj, wm, bm, gamma, beta)
    jax.block_until_ready(out)
    jax.block_until_ready(x_pre)
    print("KERNEL_OK")
</pallas_src>

<mosaic_0001>
module attributes {stable_mosaic.version = 11 : i64} {
  func.func @lg_kernel(%arg0: i32, %arg1: memref<24x128xf32, #tpu.memory_space<vmem>>, %arg2: memref<160x128xf32, #tpu.memory_space<vmem>>, %arg3: memref<24x128xf32, #tpu.memory_space<vmem>>, %arg4: memref<24x128xf32, #tpu.memory_space<vmem>>) attributes {dimension_semantics = [#tpu.dimension_semantics<arbitrary>], iteration_bounds = array<i64: 1>, scalar_prefetch = 0 : i64, scratch_operands = 0 : i64, tpu.core_type = #tpu.core_type<tc>, window_params = [{pipeline_mode = #tpu.pipeline_mode<synchronous>, transform_indices = @transform_0, window_bounds = array<i64: 24, 128>}, {pipeline_mode = #tpu.pipeline_mode<synchronous>, transform_indices = @transform_1, window_bounds = array<i64: 160, 128>}, {pipeline_mode = #tpu.pipeline_mode<synchronous>, transform_indices = @transform_2, window_bounds = array<i64: 24, 128>}, {pipeline_mode = #tpu.pipeline_mode<synchronous>, transform_indices = @transform_3, window_bounds = array<i64: 24, 128>}]} {
    %c0 = arith.constant 0 : index
    %c0_0 = arith.constant 0 : index
    %0 = vector.load %arg2[%c0, %c0_0] : memref<160x128xf32, #tpu.memory_space<vmem>>, vector<128x128xf32>
    %c128 = arith.constant 128 : index
    %c0_1 = arith.constant 0 : index
    %1 = vector.load %arg2[%c128, %c0_1] : memref<160x128xf32, #tpu.memory_space<vmem>>, vector<12x128xf32>
    %c144 = arith.constant 144 : index
    %c0_2 = arith.constant 0 : index
    %2 = vector.load %arg2[%c144, %c0_2] : memref<160x128xf32, #tpu.memory_space<vmem>>, vector<12x128xf32>
    %c0_3 = arith.constant 0 : index
    %c0_4 = arith.constant 0 : index
    %3 = vector.load %arg1[%c0_3, %c0_4] : memref<24x128xf32, #tpu.memory_space<vmem>>, vector<24x128xf32>
    %cst = arith.constant dense<0.000000e+00> : vector<24x128xf32>
    %4 = tpu.matmul %3, %0, %cst {dimension_numbers = #tpu.dot_dimension_numbers<[1], [0], [0], [1], [0, 0, 1, 1], [], []>} : vector<24x128xf32>, vector<128x128xf32>, vector<24x128xf32> -> vector<24x128xf32>
    %5 = vector.extract_strided_slice %4 {offsets = [0, 0], sizes = [12, 128], strides = [1, 1]} : vector<24x128xf32> to vector<12x128xf32>
    %6 = vector.shape_cast %5 : vector<12x128xf32> to vector<1x12x128xf32>
    %cst_5 = arith.constant dense<0.000000e+00> : vector<1xf32>
    %7 = vector.multi_reduction <add>, %6, %cst_5 [1, 2] : vector<1x12x128xf32> to vector<1xf32>
    %8 = vector.shape_cast %7 : vector<1xf32> to vector<1x1x1xf32>
    %9 = vector.extract %8[0, 0, 0] : f32 from vector<1x1x1xf32>
    %cst_6 = arith.constant 6.51041686E-4 : f32
    %10 = arith.mulf %9, %cst_6 : f32
    %11 = vector.broadcast %10 : f32 to vector<12x128xf32>
    %12 = arith.subf %5, %11 : vector<12x128xf32>
    %13 = arith.mulf %12, %12 : vector<12x128xf32>
    %14 = vector.shape_cast %13 : vector<12x128xf32> to vector<1x12x128xf32>
    %cst_7 = arith.constant dense<0.000000e+00> : vector<1xf32>
    %15 = vector.multi_reduction <add>, %14, %cst_7 [1, 2] : vector<1x12x128xf32> to vector<1xf32>
    %16 = vector.shape_cast %15 : vector<1xf32> to vector<1x1x1xf32>
    %17 = vector.extract %16[0, 0, 0] : f32 from vector<1x1x1xf32>
    %cst_8 = arith.constant 6.51041686E-4 : f32
    %18 = arith.mulf %17, %cst_8 : f32
    %cst_9 = arith.constant 9.99999974E-6 : f32
    %19 = arith.addf %18, %cst_9 : f32
    %20 = math.rsqrt %19 : f32
    %21 = vector.broadcast %20 : f32 to vector<12x128xf32>
    %22 = arith.mulf %12, %21 : vector<12x128xf32>
    %23 = arith.mulf %22, %1 : vector<12x128xf32>
    %24 = arith.addf %23, %2 : vector<12x128xf32>
    %c0_10 = arith.constant 0 : index
    %c0_11 = arith.constant 0 : index
    %25 = vector.load %arg4[%c0_10, %c0_11] : memref<24x128xf32, #tpu.memory_space<vmem>>, vector<12x128xf32>
    tpu.vector_store %arg4[%c0_10, %c0_11], %24 {strides = array<i32>} : memref<24x128xf32, #tpu.memory_space<vmem>>, vector<12x128xf32>,
    %cst_12 = arith.constant 0.000000e+00 : f32
    %26 = vector.broadcast %cst_12 : f32 to vector<12x128xf32>
    %27 = arith.maximumf %24, %26 : vector<12x128xf32>
    %c0_13 = arith.constant 0 : index
    %c0_14 = arith.constant 0 : index
    %28 = vector.load %arg3[%c0_13, %c0_14] : memref<24x128xf32, #tpu.memory_space<vmem>>, vector<12x128xf32>
    tpu.vector_store %arg3[%c0_13, %c0_14], %27 {strides = array<i32>} : memref<24x128xf32, #tpu.memory_space<vmem>>, vector<12x128xf32>,
    %29 = vector.extract_strided_slice %4 {offsets = [12, 0], sizes = [12, 128], strides = [1, 1]} : vector<24x128xf32> to vector<12x128xf32>
    %30 = vector.shape_cast %29 : vector<12x128xf32> to vector<1x12x128xf32>
    %cst_15 = arith.constant dense<0.000000e+00> : vector<1xf32>
    %31 = vector.multi_reduction <add>, %30, %cst_15 [1, 2] : vector<1x12x128xf32> to vector<1xf32>
    %32 = vector.shape_cast %31 : vector<1xf32> to vector<1x1x1xf32>
    %33 = vector.extract %32[0, 0, 0] : f32 from vector<1x1x1xf32>
    %cst_16 = arith.constant 6.51041686E-4 : f32
    %34 = arith.mulf %33, %cst_16 : f32
    %35 = vector.broadcast %34 : f32 to vector<12x128xf32>
    %36 = arith.subf %29, %35 : vector<12x128xf32>
    %37 = arith.mulf %36, %36 : vector<12x128xf32>
    %38 = vector.shape_cast %37 : vector<12x128xf32> to vector<1x12x128xf32>
    %cst_17 = arith.constant dense<0.000000e+00> : vector<1xf32>
    %39 = vector.multi_reduction <add>, %38, %cst_17 [1, 2] : vector<1x12x128xf32> to vector<1xf32>
    %40 = vector.shape_cast %39 : vector<1xf32> to vector<1x1x1xf32>
    %41 = vector.extract %40[0, 0, 0] : f32 from vector<1x1x1xf32>
    %cst_18 = arith.constant 6.51041686E-4 : f32
    %42 = arith.mulf %41, %cst_18 : f32
    %cst_19 = arith.constant 9.99999974E-6 : f32
    %43 = arith.addf %42, %cst_19 : f32
    %44 = math.rsqrt %43 : f32
    %45 = vector.broadcast %44 : f32 to vector<12x128xf32>
    %46 = arith.mulf %36, %45 : vector<12x128xf32>
    %47 = arith.mulf %46, %1 : vector<12x128xf32>
    %48 = arith.addf %47, %2 : vector<12x128xf32>
    %c12 = arith.constant 12 : index
    %c0_20 = arith.constant 0 : index
    %49 = vector.load %arg4[%c12, %c0_20] : memref<24x128xf32, #tpu.memory_space<vmem>>, vector<12x128xf32>
    tpu.vector_store %arg4[%c12, %c0_20], %48 {strides = array<i32>} : memref<24x128xf32, #tpu.memory_space<vmem>>, vector<12x128xf32>,
    %cst_21 = arith.constant 0.000000e+00 : f32
    %50 = vector.broadcast %cst_21 : f32 to vector<12x128xf32>
    %51 = arith.maximumf %48, %50 : vector<12x128xf32>
    %c12_22 = arith.constant 12 : index
    %c0_23 = arith.constant 0 : index
    %52 = vector.load %arg3[%c12_22, %c0_23] : memref<24x128xf32, #tpu.memory_space<vmem>>, vector<12x128xf32>
    tpu.vector_store %arg3[%c12_22, %c0_23], %51 {strides = array<i32>} : memref<24x128xf32, #tpu.memory_space<vmem>>, vector<12x128xf32>,
    return
  }
  func.func @transform_0(%arg0: i32) -> (i32, i32) {
    %c0_i32 = arith.constant 0 : i32
    %c0_i32_0 = arith.constant 0 : i32
    %c0_i32_1 = arith.constant 0 : i32
    return %c0_i32, %c0_i32_0 : i32, i32
  }
  func.func @transform_1(%arg0: i32) -> (i32, i32) {
    %c0_i32 = arith.constant 0 : i32
    %c0_i32_0 = arith.constant 0 : i32
    %c0_i32_1 = arith.constant 0 : i32
    return %c0_i32, %c0_i32_0 : i32, i32
  }
  func.func @transform_2(%arg0: i32) -> (i32, i32) {
    %c0_i32 = arith.constant 0 : i32
    %c0_i32_0 = arith.constant 0 : i32
    %c0_i32_1 = arith.constant 0 : i32
    return %c0_i32, %c0_i32_0 : i32, i32
  }
  func.func @transform_3(%arg0: i32) -> (i32, i32) {
    %c0_i32 = arith.constant 0 : i32
    %c0_i32_0 = arith.constant 0 : i32
    %c0_i32_1 = arith.constant 0 : i32
    return %c0_i32, %c0_i32_0 : i32, i32
  }
}

</mosaic_0001>

<bundles_post_ra>
// kernel: lg_forward.1
= control target key start
LH: loop header
LB: loop body
LE: loop exit
PB: predicated region body
PF: predicated region fallthrough
CT: control target
= control target key end

     0   :  { %v355_v0 = vmov 0.0   ;;  %vm356_vm0 = vmmov 0   ;;  %vm116_vm1 = vcmask 1043456   ;;  %s523_s1 = inlined_call_operand.vmem [shape: f32[160,128], index: 1, kind: input, shape index: {}]   ;;  %s524_s0 = inlined_call_operand.vmem [shape: f32[24,128], index: 0, kind: input, shape index: {}]   ;;  %s525_s3 = inlined_call_operand.vmem [shape: f32[24,128], index: 3, kind: output, shape index: {1}]   ;;  %s526_s2 = inlined_call_operand.vmem [shape: f32[24,128], index: 2, kind: output, shape index: {0}]  }
   0x1   :  { %264 = vmatprep.subr.mxu0 %v355_v0  ;;  %305 = vmatprep.subr.mxu1 %v355_v0  ;;  %v28_v1 = vld [vmem:[%s523_s1 + $0x78] sm:$0xff]  ;;  %v27_v2 = vld [vmem:[%s523_s1 + $0x70] sm:$0xff]  ;;  %v26_v3 = vld [vmem:[%s523_s1 + $0x68] sm:$0xff] }
   0x2   :  { %265 = vmatpush3.msra.mxu0 %v28_v1  ;;  %321 = vmatpush3.msra.mxu1 %v28_v1  ;;  %v25_v4 = vld [vmem:[%s523_s1 + $0x60] sm:$0xff]  ;;  %v24_v5 = vld [vmem:[%s523_s1 + $0x58] sm:$0xff]  ;;  %v23_v6 = vld [vmem:[%s523_s1 + $0x50] sm:$0xff] }
   0x3   :  { %266 = vmatprep.subr.mxu0 %v355_v0  ;;  %306 = vmatprep.subr.mxu1 %v355_v0  ;;  %v22_v7 = vld [vmem:[%s523_s1 + $0x48] sm:$0xff]  ;;  %v21_v8 = vld [vmem:[%s523_s1 + $0x40] sm:$0xff]  ;;  %v20_v9 = vld [vmem:[%s523_s1 + $0x38] sm:$0xff] }
   0x4   :  { %267 = vmatpush3.msra.mxu0 %v27_v2  ;;  %322 = vmatpush3.msra.mxu1 %v27_v2  ;;  %v19_v10 = vld [vmem:[%s523_s1 + $0x30] sm:$0xff]  ;;  %v18_v11 = vld [vmem:[%s523_s1 + $0x28] sm:$0xff]  ;;  %v17_v12 = vld [vmem:[%s523_s1 + $0x20] sm:$0xff] }
   0x5   :  { %268 = vmatprep.subr.mxu0 %v355_v0  ;;  %307 = vmatprep.subr.mxu1 %v355_v0  ;;  %v16_v13 = vld [vmem:[%s523_s1 + $0x18] sm:$0xff]  ;;  %v15_v14 = vld [vmem:[%s523_s1 + $0x10] sm:$0xff]  ;;  %v14_v15 = vld [vmem:[%s523_s1 + $0x8] sm:$0xff] }
   0x6   :  { %269 = vmatpush3.msra.mxu0 %v26_v3  ;;  %323 = vmatpush3.msra.mxu1 %v26_v3  ;;  %v13_v16 = vld [vmem:[%s523_s1] sm:$0xff]  ;;  %v34_v18 = vld [vmem:[%s524_s0 + $0x8] sm:$0xff]  ;;  %v35_v19 = vld [vmem:[%s524_s0 + $0x10] sm:$0xff] }
   0x7   :  { %270 = vmatprep.subr.mxu0 %v355_v0  ;;  %308 = vmatprep.subr.mxu1 %v355_v0  ;;  %v33_v17 = vld [vmem:[%s524_s0] sm:$0xff] }
   0x8   :  { %271 = vmatpush3.msra.mxu0 %v25_v4  ;;  %324 = vmatpush3.msra.mxu1 %v25_v4  ;;  %v29_v63 = vld [vmem:[%s523_s1 + $0x80] sm:$0xff]  ;;  %v31_v4 = vld [vmem:[%s523_s1 + $0x90] sm:$0xff] }
   0x9   :  { %272 = vmatprep.subr.mxu0 %v355_v0  ;;  %309 = vmatprep.subr.mxu1 %v355_v0 }
   0xa   :  { %273 = vmatpush3.msra.mxu0 %v24_v5  ;;  %325 = vmatpush3.msra.mxu1 %v24_v5  ;;  %v32_v5 = vld [vmem:[%s523_s1 + $0x98] sm:$0xf] }
   0xb   :  { %274 = vmatprep.subr.mxu0 %v355_v0  ;;  %310 = vmatprep.subr.mxu1 %v355_v0 }
   0xc   :  { %275 = vmatpush3.msra.mxu0 %v23_v6  ;;  %326 = vmatpush3.msra.mxu1 %v23_v6 }
   0xd   :  { %276 = vmatprep.subr.mxu0 %v355_v0  ;;  %311 = vmatprep.subr.mxu1 %v355_v0 }
   0xe   :  { %277 = vmatpush3.msra.mxu0 %v22_v7  ;;  %327 = vmatpush3.msra.mxu1 %v22_v7 }
   0xf   :  { %278 = vmatprep.subr.mxu0 %v355_v0  ;;  %312 = vmatprep.subr.mxu1 %v355_v0 }
  0x10   :  { %279 = vmatpush3.msra.mxu0 %v21_v8  ;;  %328 = vmatpush3.msra.mxu1 %v21_v8 }
  0x11   :  { %280 = vmatprep.subr.mxu0 %v355_v0  ;;  %313 = vmatprep.subr.mxu1 %v355_v0 }
  0x12   :  { %281 = vmatpush3.msra.mxu0 %v20_v9  ;;  %329 = vmatpush3.msra.mxu1 %v20_v9 }
  0x13   :  { %282 = vmatprep.subr.mxu0 %v355_v0  ;;  %314 = vmatprep.subr.mxu1 %v355_v0 }
  0x14   :  { %283 = vmatpush3.msra.mxu0 %v19_v10  ;;  %330 = vmatpush3.msra.mxu1 %v19_v10 }
  0x15   :  { %284 = vmatprep.subr.mxu0 %v355_v0  ;;  %315 = vmatprep.subr.mxu1 %v355_v0 }
  0x16   :  { %285 = vmatpush3.msra.mxu0 %v18_v11  ;;  %331 = vmatpush3.msra.mxu1 %v18_v11 }
  0x17   :  { %286 = vmatprep.subr.mxu0 %v355_v0  ;;  %316 = vmatprep.subr.mxu1 %v355_v0 }
  0x18   :  { %287 = vmatpush3.msra.mxu0 %v17_v12  ;;  %332 = vmatpush3.msra.mxu1 %v17_v12 }
  0x19   :  { %288 = vmatprep.subr.mxu0 %v355_v0  ;;  %317 = vmatprep.subr.mxu1 %v355_v0 }
  0x1a   :  { %289 = vmatpush3.msra.mxu0 %v16_v13  ;;  %333 = vmatpush3.msra.mxu1 %v16_v13 }
  0x1b   :  { %290 = vmatprep.subr.mxu0 %v355_v0  ;;  %318 = vmatprep.subr.mxu1 %v355_v0 }
  0x1c   :  { %291 = vmatpush3.msra.mxu0 %v15_v14  ;;  %334 = vmatpush3.msra.mxu1 %v15_v14 }
  0x1d   :  { %292 = vmatprep.subr.mxu0 %v355_v0  ;;  %319 = vmatprep.subr.mxu1 %v355_v0 }
  0x1e   :  { %293 = vmatpush3.msra.mxu0 %v14_v15  ;;  %335 = vmatpush3.msra.mxu1 %v14_v15 }
  0x1f   :  { %294 = vmatprep.subr.mxu0 %v355_v0  ;;  %320 = vmatprep.subr.mxu1 %v355_v0 }
  0x20   :  { %295 = vmatpush3.msra.mxu0 %v13_v16  ;;  %336 = vmatpush3.msra.mxu1 %v13_v16 }
  0x21   :  { %296 = vmatprep.mubr.msk.f32.mxu0 %vm356_vm0, %v355_v0  ;;  %299 = vmatprep.mubr.msk.f32.mxu1 %vm356_vm0, %v355_v0 }
  0x22   :  { %297 = vmatmul.mubr.f32.vlgmr.msra.gmra.mxu0 %v33_v17  ;;  %300 = vmatmul.mubr.f32.vlgmr.msra.gmra.mxu1 %v34_v18 }
  0x23   :  { %302 = vmatprep.mubr.msk.f32.mxu1 %vm356_vm0, %v355_v0  ;;  %v30_v0 = vld [vmem:[%s523_s1 + $0x88] sm:$0xf] }
  0x26   :  { %303 = vmatmul.mubr.f32.gmra.mxu1 %v35_v19 }
  0xe2   :  { %v102_v20 = vpop.f32.mrf.mxu0  ;;  %v469_v21 = vpop.f32.mrf.mxu1 }
  0xe3   :  { %v117_v22 = vsel %vm116_vm1, %v469_v21, 0.0  ;;  %v165_v28 = vrot.slane %v469_v21, 4 }
  0xe4   :  { %v298_v23 = vpop.f32.mrf.mxu0  ;;  %v301_v24 = vpop.f32.mrf.mxu1  ;;  %v118_v25 = vadd.f32 %v117_v22, %v102_v20 }
  0xe6   :  { %v473_v26 = vpop.f32.mrf.mxu1  ;;  %119 = vadd.xlane.f32.xlu0 %v118_v25 }
  0xe7   :  { %v166_v27 = vrot.slane %v473_v26, 4 }
  0xe8   :  { %v304_v29 = vpop.f32.mrf.mxu1 }
  0xe9   :  { %v167_v30 = vsel %vm116_vm1, %v165_v28, %v166_v27  ;;  %v170_v31 = vsel %vm116_vm1, %v166_v27, 0.0 }
  0xea   :  { %v171_v32 = vadd.f32 %v170_v31, %v167_v30  ;;  %v216_v31 = vrot.slane %v30_v0, 4 }
  0xec   :  { %172 = vadd.xlane.f32.xlu1 %v171_v32  ;;  %v215_v32 = vrot.slane %v29_v63, 4 }
 0x16f   :  { %v120_v33 = vpop.xlane.xlu0 %119 }
 0x170   :  { %v121_v34 = vrot.slane %v120_v33, 4 }
 0x172   :  { %v122_v35 = vadd.f32 %v121_v34, %v120_v33  ;;  %v225_v33 = vrot.slane %v32_v5, 4  ;;  %v224_v34 = vrot.slane %v31_v4, 4 }
 0x174   :  { %v123_v36 = vrot.slane %v122_v35, 2 }
 0x175   :  { %v173_v54 = vpop.xlane.xlu1 %172 }
 0x176   :  { %v124_v37 = vadd.f32 %v123_v36, %v122_v35  ;;  %v174_v55 = vrot.slane %v173_v54, 4  ;;  %v217_v36 = vsel %vm116_vm1, %v215_v32, %v216_v31 }
 0x178   :  { %v125_v38 = vrot.slane %v124_v37, 1  ;;  %v175_v56 = vadd.f32 %v174_v55, %v173_v54 }
 0x17a   :  { %v126_v39 = vadd.f32 %v125_v38, %v124_v37  ;;  %v176_v58 = vrot.slane %v175_v56, 2 }
 0x17c   :  { %337 = vpush %v126_v39  ;;  %v177_v59 = vadd.f32 %v176_v58, %v175_v56  ;;  %v226_v39 = vsel %vm116_vm1, %v224_v34, %v225_v33 }
 0x17e   :  { %v178_v60 = vrot.slane %v177_v59, 1 }
 0x180   :  { %v179_v62 = vadd.f32 %v178_v60, %v177_v59 }
 0x1ad   :  { %s338_s0 = spop %337 }
 0x1ae   :  { %s128_s23 = smul.f32 0.0006510417, %s338_s0 }
 0x1b0   :  { %v129_v40 = vstv %s128_s23 }
 0x1b1   :  { %v130_v41 = vsub.f32 %v102_v20, %v129_v40  ;;  %v131_v42 = vsub.f32 %v469_v21, %v129_v40 }
 0x1b3   :  { %v133_v43 = vmul.f32 %v131_v42, %v131_v42  ;;  %v132_v44 = vmul.f32 %v130_v41, %v130_v41 }
 0x1b5   :  { %v134_v45 = vsel %vm116_vm1, %v133_v43, 0.0 }
 0x1b6   :  { %v135_v46 = vadd.f32 %v134_v45, %v132_v44 }
 0x1b8   :  { %136 = vadd.xlane.f32.xlu0 %v135_v46 }
 0x241   :  { %v137_v47 = vpop.xlane.xlu0 %136 }
 0x242   :  { %v138_v48 = vrot.slane %v137_v47, 4 }
 0x244   :  { %v139_v49 = vadd.f32 %v138_v48, %v137_v47 }
 0x246   :  { %v140_v50 = vrot.slane %v139_v49, 2 }
 0x248   :  { %v141_v51 = vadd.f32 %v140_v50, %v139_v49 }
 0x24a   :  { %v142_v52 = vrot.slane %v141_v51, 1 }
 0x24c   :  { %v143_v53 = vadd.f32 %v142_v52, %v141_v51 }
 0x24e   :  { %339 = vpush %v143_v53 }
 0x27f   :  { %s340_s24 = spop %339 }
 0x280   :  { %s145_s25 = smul.f32 0.0006510417, %s340_s24 }
 0x282   :  { %s146_s26 = sadd.f32 1e-05, %s145_s25 }
 0x284   :  { %v147_v57 = vstv %s146_s26 }
 0x285   :  { %351 = vrsqrt.f32 %v147_v57 }
 0x292   :  { %v352_v61 = vpop.eup %351 }
 0x293   :  { %341 = vpush %v352_v61 }
 0x294   :  { %343 = vpush %v179_v62 }
 0x2c4   :  { %s342_s27 = spop %341 }
 0x2c5   :  { %v150_v1 = vstv %s342_s27  ;;  %s344_s5 = spop %343 }
 0x2c6   :  { %v151_v2 = vmul.f32 %v150_v1, %v130_v41  ;;  %v152_v3 = vmul.f32 %v150_v1, %v131_v42  ;;  %s181_s6 = smul.f32 0.0006510417, %s344_s5 }
 0x2c8   :  { %v153_v6 = vmul.f32 %v151_v2, %v29_v63  ;;  %v154_v7 = vmul.f32 %v152_v3, %v30_v0  ;;  %v182_v8 = vstv %s181_s6 }
 0x2c9   :  { %v183_v9 = vsub.f32 %v469_v21, %v182_v8  ;;  %v184_v10 = vsub.f32 %v473_v26, %v182_v8 }
 0x2ca   :  { %v155_v11 = vadd.f32 %v153_v6, %v31_v4  ;;  %v156_v12 = vadd.f32 %v154_v7, %v32_v5 }
 0x2cb   :  { %v185_v13 = vmul.f32 %v183_v9, %v183_v9  ;;  %v186_v14 = vmul.f32 %v184_v10, %v184_v10 }
 0x2cc   :  { %157 = vst [vmem:[%s525_s3] sm:$0xff] %v155_v11  ;;  %158 = vst [vmem:[%s525_s3 + $0x8] sm:$0xf] %v156_v12  ;;  %v159_v15 = vmax.f32 %v155_v11, 0.0  ;;  %v160_v16 = vmax.f32 %v156_v12, 0.0 }
 0x2cd   :  { %v189_v17 = vrot.slane %v185_v13, 4  ;;  %v190_v18 = vrot.slane %v186_v14, 4 }
 0x2ce   :  { %161 = vst [vmem:[%s526_s2] sm:$0xff] %v159_v15  ;;  %162 = vst [vmem:[%s526_s2 + $0x8] sm:$0xf] %v160_v16 }
 0x2cf   :  { %v191_v19 = vsel %vm116_vm1, %v189_v17, %v190_v18  ;;  %v194_v20 = vsel %vm116_vm1, %v190_v18, 0.0 }
 0x2d0   :  { %v195_v21 = vadd.f32 %v194_v20, %v191_v19 }
 0x2d2   :  { %196 = vadd.xlane.f32.xlu1 %v195_v21 }
 0x35b   :  { %v197_v22 = vpop.xlane.xlu1 %196 }
 0x35c   :  { %v198_v23 = vrot.slane %v197_v22, 4 }
 0x35e   :  { %v199_v24 = vadd.f32 %v198_v23, %v197_v22 }
 0x360   :  { %v200_v25 = vrot.slane %v199_v24, 2 }
 0x362   :  { %v201_v26 = vadd.f32 %v200_v25, %v199_v24 }
 0x364   :  { %v202_v27 = vrot.slane %v201_v26, 1 }
 0x366   :  { %v203_v28 = vadd.f32 %v202_v27, %v201_v26 }
 0x368   :  { %345 = vpush %v203_v28 }
 0x399   :  { %s346_s18 = spop %345 }
 0x39a   :  { %s205_s19 = smul.f32 0.0006510417, %s346_s18 }
 0x39c   :  { %s206_s20 = sadd.f32 1e-05, %s205_s19 }
 0x39e   :  { %v207_v29 = vstv %s206_s20 }
 0x39f   :  { %353 = vrsqrt.f32 %v207_v29 }
 0x3ac   :  { %v354_v30 = vpop.eup %353 }
 0x3ad   :  { %347 = vpush %v354_v30 }
 0x3de   :  { %s348_s21 = spop %347 }
 0x3df   :  { %v210_v35 = vstv %s348_s21 }
 0x3e0   :  { %v211_v37 = vmul.f32 %v210_v35, %v183_v9  ;;  %v212_v38 = vmul.f32 %v210_v35, %v184_v10 }
 0x3e2   :  { %v220_v40 = vmul.f32 %v215_v32, %v211_v37  ;;  %v221_v41 = vmul.f32 %v217_v36, %v212_v38 }
 0x3e4   :  { %v229_v42 = vadd.f32 %v224_v34, %v220_v40  ;;  %v230_v43 = vadd.f32 %v226_v39, %v221_v41 }
 0x3e6   :  { %231 = vst [vmem:[%s525_s3 + $0x8] sm:$0xf0] %v229_v42  ;;  %232 = vst [vmem:[%s525_s3 + $0x10] sm:$0xff] %v230_v43  ;;  %v233_v44 = vmax.f32 %v229_v42, 0.0  ;;  %v234_v45 = vmax.f32 %v230_v43, 0.0 }
 0x3e8   :  { %235 = vst [vmem:[%s526_s2 + $0x8] sm:$0xf0] %v233_v44  ;;  %236 = vst [vmem:[%s526_s2 + $0x10] sm:$0xff] %v234_v45 }

</bundles_post_ra>
